<compile_context>
chip_gen: v5e
topology: v5e:2x2
jax: 0.10.0
libtpu: 0.0.40
codegen_flags: <defaults>
</compile_context>

<pallas_src>
import functools

import jax
import jax.numpy as jnp
from jax.experimental import pallas as pl
from jax.experimental.pallas import tpu as pltpu

BN_EPS = 1e-5
LANE = 128
MIB = 1024 * 1024

_VMEM_SPEC = pl.BlockSpec(memory_space=pltpu.MemorySpace.VMEM)


# --------------------------------------------------------------------------
# Fused kernel (built per static layer count / class count)
# --------------------------------------------------------------------------
def _make_fused_kernel(n_conv, n_classes):
    def kernel(adj_ref, x_ref, *refs):
        out_ref = refs[-1]
        params = refs[:-1]
        adj = adj_ref[...]                      # (N, N) bf16, self-loop folded in
        x_bf16 = x_ref[...]                     # (N, F_pad) bf16 input features

        idx = 0
        for _ in range(n_conv):
            w1 = params[idx][...]               # bf16
            b1 = params[idx + 1][...]           # f32
            w2 = params[idx + 2][...]           # bf16
            b2 = params[idx + 3][...]           # f32
            gamma = params[idx + 4][...]        # f32
            beta = params[idx + 5][...]         # f32
            idx += 6

            # GINConv aggregation: (A + (1+eps) I) @ x, bf16 MXU, f32 accumulation.
            agg = jnp.dot(adj, x_bf16, preferred_element_type=jnp.float32)
            # MLP: Linear -> ReLU -> Linear (bf16 operands, f32 accum + bias).
            h = jnp.dot(agg.astype(jnp.bfloat16), w1,
                        preferred_element_type=jnp.float32) + b1
            h = jnp.maximum(h, 0.0)
            h = jnp.dot(h.astype(jnp.bfloat16), w2,
                        preferred_element_type=jnp.float32) + b2
            # outer ReLU (F.relu(layer(x, edge_index)))
            h = jnp.maximum(h, 0.0)

            # BatchNorm1d over nodes (training mode, biased variance), f32 math.
            # Single-pass stats; scale/shift folded to one multiply-add.
            # Padded (all-zero) columns: mean=0, var=0, gamma_pad=0 -> stay zero.
            mean = jnp.mean(h, axis=0, keepdims=True)
            ex2 = jnp.mean(h * h, axis=0, keepdims=True)
            var = ex2 - mean * mean
            scale = gamma * jax.lax.rsqrt(var + BN_EPS)
            shift = beta - mean * scale
            x_f32 = h * scale + shift
            x_bf16 = x_f32.astype(jnp.bfloat16)

        # Head: fc1 -> ReLU -> fc2 -> log_softmax over real classes (f32 math).
        fw1 = params[idx][...]
        fb1 = params[idx + 1][...]
        fw2 = params[idx + 2][...]
        fb2 = params[idx + 3][...]
        h = jnp.dot(x_bf16, fw1, preferred_element_type=jnp.float32) + fb1
        h = jnp.maximum(h, 0.0)
        logits = jnp.dot(h.astype(jnp.bfloat16), fw2,
                         preferred_element_type=jnp.float32) + fb2
        # Mask padded class columns so they don't pollute the normalizer.
        col = jax.lax.broadcasted_iota(jnp.int32, logits.shape, 1)
        logits = jnp.where(col < n_classes, logits, -1e30)
        m = jnp.max(logits, axis=-1, keepdims=True)
        s = logits - m
        lse = jnp.log(jnp.sum(jnp.exp(s), axis=-1, keepdims=True))
        out_ref[...] = s - lse                  # lane-dense (N, C_pad) store

    return kernel


# --------------------------------------------------------------------------
# Helpers: padding, adjacency, VMEM sizing
# --------------------------------------------------------------------------
def _round_up(n, m):
    return (n + m - 1) // m * m


def _pad2(a, rows, cols, dtype=None):
    out = jnp.pad(a, ((0, rows - a.shape[0]), (0, cols - a.shape[1])))
    return out.astype(dtype) if dtype is not None else out


def build_adjacency(edge_index, num_nodes, eps=0.0):
    """Dense adjacency with the GIN self term folded in: A[dst,src]+=1, diag += 1+eps.

    Returned as bf16 (exact for edge multiplicities up to 256)."""
    src = edge_index[0]
    dst = edge_index[1]
    adj = jnp.zeros((num_nodes, num_nodes), jnp.float32).at[dst, src].add(1.0)
    diag = jnp.arange(num_nodes)
    adj = adj.at[diag, diag].add(1.0 + eps)
    return adj.astype(jnp.bfloat16)


def _pick_vmem_limit(operand_bytes):
    """Generation-aware scoped-VMEM limit: footprint-driven, clamped to capacity."""
    try:
        cap = int(pltpu.get_tpu_info().vmem_capacity_bytes)
    except Exception:
        cap = 64 * MIB          # conservative (v7x) fallback
    # operands (single-buffered: no grid) + f32 per-layer temps + headroom
    need = 4 * operand_bytes + 16 * MIB
    return int(max(32 * MIB, min(need, cap - 8 * MIB)))


# --------------------------------------------------------------------------
# Parameter initialization (deterministic, PyTorch-style uniform), padded to 128.
# Weight matrices are stored in bf16 (MXU operands); biases/gamma/beta in f32.
# --------------------------------------------------------------------------
def _linear_init(key, fan_in, fan_out):
    kw, kb = jax.random.split(key)
    bound = 1.0 / jnp.sqrt(fan_in)
    w = jax.random.uniform(kw, (fan_in, fan_out), jnp.float32, -bound, bound)
    b = jax.random.uniform(kb, (1, fan_out), jnp.float32, -bound, bound)
    return w, b


def init_gin_params(key, in_feats, n_hidden, n_classes, n_layers):
    f_pad = _round_up(in_feats, LANE)
    h_pad = _round_up(n_hidden, LANE)
    c_pad = _round_up(n_classes, LANE)

    keys = jax.random.split(key, 2 * (n_layers - 1) + 2)
    conv_params = []
    k_idx = 0
    din, din_pad = in_feats, f_pad
    for _ in range(n_layers - 1):
        w1, b1 = _linear_init(keys[k_idx], din, n_hidden); k_idx += 1
        w2, b2 = _linear_init(keys[k_idx], n_hidden, n_hidden); k_idx += 1
        gamma = jnp.ones((1, n_hidden), jnp.float32)   # BatchNorm1d default init
        beta = jnp.zeros((1, n_hidden), jnp.float32)
        conv_params.append((
            _pad2(w1, din_pad, h_pad, jnp.bfloat16), _pad2(b1, 1, h_pad),
            _pad2(w2, h_pad, h_pad, jnp.bfloat16), _pad2(b2, 1, h_pad),
            _pad2(gamma, 1, h_pad), _pad2(beta, 1, h_pad),
        ))
        din, din_pad = n_hidden, h_pad

    fw1, fb1 = _linear_init(keys[k_idx], n_hidden, n_hidden); k_idx += 1
    fw2, fb2 = _linear_init(keys[k_idx], n_hidden, n_classes)
    head = (_pad2(fw1, h_pad, h_pad, jnp.bfloat16), _pad2(fb1, 1, h_pad),
            _pad2(fw2, h_pad, c_pad, jnp.bfloat16), _pad2(fb2, 1, c_pad))
    return {"conv": conv_params, "head": head}


# --------------------------------------------------------------------------
# Fused forward
# --------------------------------------------------------------------------
@functools.partial(jax.jit, static_argnames=("n_classes",))
def gin_forward(adj, features, params, *, n_classes):
    n, f = features.shape
    f_pad = _round_up(f, LANE)
    # Padded, bf16 input features (the first MXU operand).
    x = jnp.pad(features, ((0, 0), (0, f_pad - f))).astype(jnp.bfloat16)

    conv_params = params["conv"]
    head = params["head"]
    n_conv = len(conv_params)
    h_pad = conv_params[0][2].shape[1]
    c_pad = head[2].shape[1]

    flat = []
    for p in conv_params:
        flat.extend(p)
    flat.extend(head)

    # Rough cost estimate for the XLA scheduler.
    flops = 0
    for p in conv_params:
        k1 = p[0].shape[0]
        flops += 2 * n * n * k1 + 2 * n * k1 * h_pad + 2 * n * h_pad * h_pad
    flops += 2 * n * h_pad * h_pad + 2 * n * h_pad * c_pad
    operand_bytes = sum(int(a.size) * a.dtype.itemsize for a in ([adj, x] + flat))
    out_bytes = n * c_pad * 4
    cost = pl.CostEstimate(
        flops=int(flops),
        transcendentals=int(n * c_pad + n_conv * h_pad),
        bytes_accessed=int(operand_bytes + out_bytes),
    )

    kernel = _make_fused_kernel(n_conv, n_classes)
    out_padded = pl.pallas_call(
        kernel,
        out_shape=jax.ShapeDtypeStruct((n, c_pad), jnp.float32),
        in_specs=[_VMEM_SPEC] * (2 + len(flat)),
        out_specs=_VMEM_SPEC,
        cost_estimate=cost,
        compiler_params=pltpu.CompilerParams(
            vmem_limit_bytes=_pick_vmem_limit(operand_bytes + out_bytes)),
    )(adj, x, *flat)
    # Slice back to the real class count (consumers that accept the lane-dense
    # (N, c_pad) slab can skip this copy).
    return out_padded[:, :n_classes]


# --------------------------------------------------------------------------
if __name__ == "__main__":
    N = 64          # nodes
    E = 256         # edges
    IN_FEATS = 16
    N_HIDDEN = 32
    N_CLASSES = 8
    N_LAYERS = 3    # -> 2 GINConv layers
    # dropout arg exists in __init__ but is unused in forward; nothing to do.

    key = jax.random.PRNGKey(0)
    k_feat, k_edge, k_param = jax.random.split(key, 3)

    features = jax.random.normal(k_feat, (N, IN_FEATS), jnp.float32)
    edge_index = jax.random.randint(k_edge, (2, E), 0, N, dtype=jnp.int32)

    params = init_gin_params(k_param, IN_FEATS, N_HIDDEN, N_CLASSES, N_LAYERS)

    # Adjacency (with folded self-loop) built once, outside the per-step jit.
    adj = build_adjacency(edge_index, N, eps=0.0)

    out = gin_forward(adj, features, params, n_classes=N_CLASSES)
    out = jax.block_until_ready(out)

    assert out.shape == (N, N_CLASSES)
    # log_softmax rows should sum (in prob space) to ~1
    assert jnp.allclose(jnp.exp(out).sum(axis=-1), 1.0, atol=1e-4)
    print("KERNEL_OK")
</pallas_src>

<mosaic_0001>
module attributes {stable_mosaic.version = 11 : i64} {
  func.func @kernel(%arg0: memref<64x64xbf16, #tpu.memory_space<vmem>>, %arg1: memref<64x128xbf16, #tpu.memory_space<vmem>>, %arg2: memref<128x128xbf16, #tpu.memory_space<vmem>>, %arg3: memref<1x128xf32, #tpu.memory_space<vmem>>, %arg4: memref<128x128xbf16, #tpu.memory_space<vmem>>, %arg5: memref<1x128xf32, #tpu.memory_space<vmem>>, %arg6: memref<1x128xf32, #tpu.memory_space<vmem>>, %arg7: memref<1x128xf32, #tpu.memory_space<vmem>>, %arg8: memref<128x128xbf16, #tpu.memory_space<vmem>>, %arg9: memref<1x128xf32, #tpu.memory_space<vmem>>, %arg10: memref<128x128xbf16, #tpu.memory_space<vmem>>, %arg11: memref<1x128xf32, #tpu.memory_space<vmem>>, %arg12: memref<1x128xf32, #tpu.memory_space<vmem>>, %arg13: memref<1x128xf32, #tpu.memory_space<vmem>>, %arg14: memref<128x128xbf16, #tpu.memory_space<vmem>>, %arg15: memref<1x128xf32, #tpu.memory_space<vmem>>, %arg16: memref<128x128xbf16, #tpu.memory_space<vmem>>, %arg17: memref<1x128xf32, #tpu.memory_space<vmem>>, %arg18: memref<64x128xf32, #tpu.memory_space<vmem>>) attributes {dimension_semantics = [], scalar_prefetch = 0 : i64, scratch_operands = 0 : i64, tpu.core_type = #tpu.core_type<tc>} {
    %c0 = arith.constant 0 : index
    %c0_0 = arith.constant 0 : index
    %0 = vector.load %arg0[%c0, %c0_0] : memref<64x64xbf16, #tpu.memory_space<vmem>>, vector<64x64xbf16>
    %c0_1 = arith.constant 0 : index
    %c0_2 = arith.constant 0 : index
    %1 = vector.load %arg1[%c0_1, %c0_2] : memref<64x128xbf16, #tpu.memory_space<vmem>>, vector<64x128xbf16>
    %c0_3 = arith.constant 0 : index
    %c0_4 = arith.constant 0 : index
    %2 = vector.load %arg2[%c0_3, %c0_4] : memref<128x128xbf16, #tpu.memory_space<vmem>>, vector<128x128xbf16>
    %c0_5 = arith.constant 0 : index
    %c0_6 = arith.constant 0 : index
    %3 = vector.load %arg3[%c0_5, %c0_6] : memref<1x128xf32, #tpu.memory_space<vmem>>, vector<1x128xf32>
    %c0_7 = arith.constant 0 : index
    %c0_8 = arith.constant 0 : index
    %4 = vector.load %arg4[%c0_7, %c0_8] : memref<128x128xbf16, #tpu.memory_space<vmem>>, vector<128x128xbf16>
    %c0_9 = arith.constant 0 : index
    %c0_10 = arith.constant 0 : index
    %5 = vector.load %arg5[%c0_9, %c0_10] : memref<1x128xf32, #tpu.memory_space<vmem>>, vector<1x128xf32>
    %c0_11 = arith.constant 0 : index
    %c0_12 = arith.constant 0 : index
    %6 = vector.load %arg6[%c0_11, %c0_12] : memref<1x128xf32, #tpu.memory_space<vmem>>, vector<1x128xf32>
    %c0_13 = arith.constant 0 : index
    %c0_14 = arith.constant 0 : index
    %7 = vector.load %arg7[%c0_13, %c0_14] : memref<1x128xf32, #tpu.memory_space<vmem>>, vector<1x128xf32>
    %cst = arith.constant dense<0.000000e+00> : vector<64x128xf32>
    %8 = tpu.matmul %0, %1, %cst {dimension_numbers = #tpu.dot_dimension_numbers<[1], [0], [0], [1], [0, 0, 1, 1], [], []>} : vector<64x64xbf16>, vector<64x128xbf16>, vector<64x128xf32> -> vector<64x128xf32>
    %9 = arith.truncf %8 : vector<64x128xf32> to vector<64x128xbf16>
    %cst_15 = arith.constant dense<0.000000e+00> : vector<64x128xf32>
    %10 = tpu.matmul %9, %2, %cst_15 {dimension_numbers = #tpu.dot_dimension_numbers<[1], [0], [0], [1], [0, 0, 1, 1], [], []>} : vector<64x128xbf16>, vector<128x128xbf16>, vector<64x128xf32> -> vector<64x128xf32>
    %11 = vector.broadcast %3 : vector<1x128xf32> to vector<64x128xf32>
    %12 = arith.addf %10, %11 : vector<64x128xf32>
    %cst_16 = arith.constant 0.000000e+00 : f32
    %13 = vector.broadcast %cst_16 : f32 to vector<64x128xf32>
    %14 = arith.maximumf %12, %13 : vector<64x128xf32>
    %15 = arith.truncf %14 : vector<64x128xf32> to vector<64x128xbf16>
    %cst_17 = arith.constant dense<0.000000e+00> : vector<64x128xf32>
    %16 = tpu.matmul %15, %4, %cst_17 {dimension_numbers = #tpu.dot_dimension_numbers<[1], [0], [0], [1], [0, 0, 1, 1], [], []>} : vector<64x128xbf16>, vector<128x128xbf16>, vector<64x128xf32> -> vector<64x128xf32>
    %17 = vector.broadcast %5 : vector<1x128xf32> to vector<64x128xf32>
    %18 = arith.addf %16, %17 : vector<64x128xf32>
    %cst_18 = arith.constant 0.000000e+00 : f32
    %19 = vector.broadcast %cst_18 : f32 to vector<64x128xf32>
    %20 = arith.maximumf %18, %19 : vector<64x128xf32>
    %cst_19 = arith.constant dense<0.000000e+00> : vector<128xf32>
    %21 = vector.multi_reduction <add>, %20, %cst_19 [0] : vector<64x128xf32> to vector<128xf32>
    %22 = vector.shape_cast %21 : vector<128xf32> to vector<1x128xf32>
    %cst_20 = arith.constant 6.400000e+01 : f32
    %23 = vector.broadcast %cst_20 : f32 to vector<1x128xf32>
    %24 = arith.divf %22, %23 : vector<1x128xf32>
    %25 = arith.mulf %20, %20 : vector<64x128xf32>
    %cst_21 = arith.constant dense<0.000000e+00> : vector<128xf32>
    %26 = vector.multi_reduction <add>, %25, %cst_21 [0] : vector<64x128xf32> to vector<128xf32>
    %27 = vector.shape_cast %26 : vector<128xf32> to vector<1x128xf32>
    %cst_22 = arith.constant 6.400000e+01 : f32
    %28 = vector.broadcast %cst_22 : f32 to vector<1x128xf32>
    %29 = arith.divf %27, %28 : vector<1x128xf32>
    %30 = arith.mulf %24, %24 : vector<1x128xf32>
    %31 = arith.subf %29, %30 : vector<1x128xf32>
    %cst_23 = arith.constant 9.99999974E-6 : f32
    %32 = vector.broadcast %cst_23 : f32 to vector<1x128xf32>
    %33 = arith.addf %31, %32 : vector<1x128xf32>
    %34 = math.rsqrt %33 : vector<1x128xf32>
    %35 = arith.mulf %6, %34 : vector<1x128xf32>
    %36 = arith.mulf %24, %35 : vector<1x128xf32>
    %37 = arith.subf %7, %36 : vector<1x128xf32>
    %38 = vector.broadcast %35 : vector<1x128xf32> to vector<64x128xf32>
    %39 = arith.mulf %20, %38 : vector<64x128xf32>
    %40 = vector.broadcast %37 : vector<1x128xf32> to vector<64x128xf32>
    %41 = arith.addf %39, %40 : vector<64x128xf32>
    %42 = arith.truncf %41 : vector<64x128xf32> to vector<64x128xbf16>
    %c0_24 = arith.constant 0 : index
    %c0_25 = arith.constant 0 : index
    %43 = vector.load %arg8[%c0_24, %c0_25] : memref<128x128xbf16, #tpu.memory_space<vmem>>, vector<128x128xbf16>
    %c0_26 = arith.constant 0 : index
    %c0_27 = arith.constant 0 : index
    %44 = vector.load %arg9[%c0_26, %c0_27] : memref<1x128xf32, #tpu.memory_space<vmem>>, vector<1x128xf32>
    %c0_28 = arith.constant 0 : index
    %c0_29 = arith.constant 0 : index
    %45 = vector.load %arg10[%c0_28, %c0_29] : memref<128x128xbf16, #tpu.memory_space<vmem>>, vector<128x128xbf16>
    %c0_30 = arith.constant 0 : index
    %c0_31 = arith.constant 0 : index
    %46 = vector.load %arg11[%c0_30, %c0_31] : memref<1x128xf32, #tpu.memory_space<vmem>>, vector<1x128xf32>
    %c0_32 = arith.constant 0 : index
    %c0_33 = arith.constant 0 : index
    %47 = vector.load %arg12[%c0_32, %c0_33] : memref<1x128xf32, #tpu.memory_space<vmem>>, vector<1x128xf32>
    %c0_34 = arith.constant 0 : index
    %c0_35 = arith.constant 0 : index
    %48 = vector.load %arg13[%c0_34, %c0_35] : memref<1x128xf32, #tpu.memory_space<vmem>>, vector<1x128xf32>
    %cst_36 = arith.constant dense<0.000000e+00> : vector<64x128xf32>
    %49 = tpu.matmul %0, %42, %cst_36 {dimension_numbers = #tpu.dot_dimension_numbers<[1], [0], [0], [1], [0, 0, 1, 1], [], []>} : vector<64x64xbf16>, vector<64x128xbf16>, vector<64x128xf32> -> vector<64x128xf32>
    %50 = arith.truncf %49 : vector<64x128xf32> to vector<64x128xbf16>
    %cst_37 = arith.constant dense<0.000000e+00> : vector<64x128xf32>
    %51 = tpu.matmul %50, %43, %cst_37 {dimension_numbers = #tpu.dot_dimension_numbers<[1], [0], [0], [1], [0, 0, 1, 1], [], []>} : vector<64x128xbf16>, vector<128x128xbf16>, vector<64x128xf32> -> vector<64x128xf32>
    %52 = vector.broadcast %44 : vector<1x128xf32> to vector<64x128xf32>
    %53 = arith.addf %51, %52 : vector<64x128xf32>
    %cst_38 = arith.constant 0.000000e+00 : f32
    %54 = vector.broadcast %cst_38 : f32 to vector<64x128xf32>
    %55 = arith.maximumf %53, %54 : vector<64x128xf32>
    %56 = arith.truncf %55 : vector<64x128xf32> to vector<64x128xbf16>
    %cst_39 = arith.constant dense<0.000000e+00> : vector<64x128xf32>
    %57 = tpu.matmul %56, %45, %cst_39 {dimension_numbers = #tpu.dot_dimension_numbers<[1], [0], [0], [1], [0, 0, 1, 1], [], []>} : vector<64x128xbf16>, vector<128x128xbf16>, vector<64x128xf32> -> vector<64x128xf32>
    %58 = vector.broadcast %46 : vector<1x128xf32> to vector<64x128xf32>
    %59 = arith.addf %57, %58 : vector<64x128xf32>
    %cst_40 = arith.constant 0.000000e+00 : f32
    %60 = vector.broadcast %cst_40 : f32 to vector<64x128xf32>
    %61 = arith.maximumf %59, %60 : vector<64x128xf32>
    %cst_41 = arith.constant dense<0.000000e+00> : vector<128xf32>
    %62 = vector.multi_reduction <add>, %61, %cst_41 [0] : vector<64x128xf32> to vector<128xf32>
    %63 = vector.shape_cast %62 : vector<128xf32> to vector<1x128xf32>
    %cst_42 = arith.constant 6.400000e+01 : f32
    %64 = vector.broadcast %cst_42 : f32 to vector<1x128xf32>
    %65 = arith.divf %63, %64 : vector<1x128xf32>
    %66 = arith.mulf %61, %61 : vector<64x128xf32>
    %cst_43 = arith.constant dense<0.000000e+00> : vector<128xf32>
    %67 = vector.multi_reduction <add>, %66, %cst_43 [0] : vector<64x128xf32> to vector<128xf32>
    %68 = vector.shape_cast %67 : vector<128xf32> to vector<1x128xf32>
    %cst_44 = arith.constant 6.400000e+01 : f32
    %69 = vector.broadcast %cst_44 : f32 to vector<1x128xf32>
    %70 = arith.divf %68, %69 : vector<1x128xf32>
    %71 = arith.mulf %65, %65 : vector<1x128xf32>
    %72 = arith.subf %70, %71 : vector<1x128xf32>
    %cst_45 = arith.constant 9.99999974E-6 : f32
    %73 = vector.broadcast %cst_45 : f32 to vector<1x128xf32>
    %74 = arith.addf %72, %73 : vector<1x128xf32>
    %75 = math.rsqrt %74 : vector<1x128xf32>
    %76 = arith.mulf %47, %75 : vector<1x128xf32>
    %77 = arith.mulf %65, %76 : vector<1x128xf32>
    %78 = arith.subf %48, %77 : vector<1x128xf32>
    %79 = vector.broadcast %76 : vector<1x128xf32> to vector<64x128xf32>
    %80 = arith.mulf %61, %79 : vector<64x128xf32>
    %81 = vector.broadcast %78 : vector<1x128xf32> to vector<64x128xf32>
    %82 = arith.addf %80, %81 : vector<64x128xf32>
    %83 = arith.truncf %82 : vector<64x128xf32> to vector<64x128xbf16>
    %c0_46 = arith.constant 0 : index
    %c0_47 = arith.constant 0 : index
    %84 = vector.load %arg14[%c0_46, %c0_47] : memref<128x128xbf16, #tpu.memory_space<vmem>>, vector<128x128xbf16>
    %c0_48 = arith.constant 0 : index
    %c0_49 = arith.constant 0 : index
    %85 = vector.load %arg15[%c0_48, %c0_49] : memref<1x128xf32, #tpu.memory_space<vmem>>, vector<1x128xf32>
    %c0_50 = arith.constant 0 : index
    %c0_51 = arith.constant 0 : index
    %86 = vector.load %arg16[%c0_50, %c0_51] : memref<128x128xbf16, #tpu.memory_space<vmem>>, vector<128x128xbf16>
    %c0_52 = arith.constant 0 : index
    %c0_53 = arith.constant 0 : index
    %87 = vector.load %arg17[%c0_52, %c0_53] : memref<1x128xf32, #tpu.memory_space<vmem>>, vector<1x128xf32>
    %cst_54 = arith.constant dense<0.000000e+00> : vector<64x128xf32>
    %88 = tpu.matmul %83, %84, %cst_54 {dimension_numbers = #tpu.dot_dimension_numbers<[1], [0], [0], [1], [0, 0, 1, 1], [], []>} : vector<64x128xbf16>, vector<128x128xbf16>, vector<64x128xf32> -> vector<64x128xf32>
    %89 = vector.broadcast %85 : vector<1x128xf32> to vector<64x128xf32>
    %90 = arith.addf %88, %89 : vector<64x128xf32>
    %cst_55 = arith.constant 0.000000e+00 : f32
    %91 = vector.broadcast %cst_55 : f32 to vector<64x128xf32>
    %92 = arith.maximumf %90, %91 : vector<64x128xf32>
    %93 = arith.truncf %92 : vector<64x128xf32> to vector<64x128xbf16>
    %cst_56 = arith.constant dense<0.000000e+00> : vector<64x128xf32>
    %94 = tpu.matmul %93, %86, %cst_56 {dimension_numbers = #tpu.dot_dimension_numbers<[1], [0], [0], [1], [0, 0, 1, 1], [], []>} : vector<64x128xbf16>, vector<128x128xbf16>, vector<64x128xf32> -> vector<64x128xf32>
    %95 = vector.broadcast %87 : vector<1x128xf32> to vector<64x128xf32>
    %96 = arith.addf %94, %95 : vector<64x128xf32>
    %97 = tpu.iota {dimensions = array<i32: 1>} : vector<64x128xi32>
    %c8_i32 = arith.constant 8 : i32
    %98 = vector.broadcast %c8_i32 : i32 to vector<64x128xi32>
    %99 = arith.cmpi slt, %97, %98 : vector<64x128xi32>
    %cst_57 = arith.constant -1.000000e+30 : f32
    %100 = vector.broadcast %cst_57 : f32 to vector<64x128xf32>
    %101 = arith.select %99, %96, %100 : vector<64x128xi1>, vector<64x128xf32>
    %cst_58 = arith.constant dense<0xFF800000> : vector<64xf32>
    %102 = vector.multi_reduction <maximumf>, %101, %cst_58 [1] : vector<64x128xf32> to vector<64xf32>
    %103 = vector.shape_cast %102 : vector<64xf32> to vector<64x1xf32>
    %104 = vector.broadcast %103 : vector<64x1xf32> to vector<64x128xf32>
    %105 = arith.subf %101, %104 : vector<64x128xf32>
    %106 = math.exp %105 : vector<64x128xf32>
    %cst_59 = arith.constant dense<0.000000e+00> : vector<64xf32>
    %107 = vector.multi_reduction <add>, %106, %cst_59 [1] : vector<64x128xf32> to vector<64xf32>
    %108 = vector.shape_cast %107 : vector<64xf32> to vector<64x1xf32>
    %109 = math.log %108 : vector<64x1xf32>
    %110 = vector.broadcast %109 : vector<64x1xf32> to vector<64x128xf32>
    %111 = arith.subf %105, %110 : vector<64x128xf32>
    %c0_60 = arith.constant 0 : index
    %c0_61 = arith.constant 0 : index
    %112 = vector.load %arg18[%c0_60, %c0_61] : memref<64x128xf32, #tpu.memory_space<vmem>>, vector<64x128xf32>
    tpu.vector_store %arg18[%c0_60, %c0_61], %111 {strides = array<i32>} : memref<64x128xf32, #tpu.memory_space<vmem>>, vector<64x128xf32>,
    return
  }
}

</mosaic_0001>

<bundles_post_ra>
// kernel: gin_forward.1
= control target key start
LH: loop header
LB: loop body
LE: loop exit
PB: predicated region body
PF: predicated region fallthrough
CT: control target
= control target key end

     0   :  { %s1998_s0 = inlined_call_operand.hbm [shape: bf16[64,64], index: 0, kind: input, shape index: {}]   ;;  %s1999_s1 = inlined_call_operand.vmem [shape: bf16[64,128], index: 1, kind: input, shape index: {}]   ;;  %s2000_s2 = inlined_call_operand.vmem [shape: bf16[128,128], index: 2, kind: input, shape index: {}]   ;;  %s2001_s3 = inlined_call_operand.vmem [shape: f32[1,128], index: 3, kind: input, shape index: {}]   ;;  %s2002_s4 = inlined_call_operand.vmem [shape: bf16[128,128], index: 4, kind: input, shape index: {}]   ;;  %s2003_s5 = inlined_call_operand.vmem [shape: f32[1,128], index: 5, kind: input, shape index: {}]   ;;  %s2004_s6 = inlined_call_operand.vmem [shape: f32[1,128], index: 6, kind: input, shape index: {}]   ;;  %s2005_s7 = inlined_call_operand.vmem [shape: f32[1,128], index: 7, kind: input, shape index: {}]   ;;  %s2006_s8 = inlined_call_operand.hbm [shape: bf16[128,128], index: 8, kind: input, shape index: {}]   ;;  %s2007_s9 = inlined_call_operand.vmem [shape: f32[1,128], index: 9, kind: input, shape index: {}]   ;;  %s2008_s10 = inlined_call_operand.hbm [shape: bf16[128,128], index: 10, kind: input, shape index: {}]   ;;  %s2009_s11 = inlined_call_operand.vmem [shape: f32[1,128], index: 11, kind: input, shape index: {}]   ;;  %s2010_s12 = inlined_call_operand.vmem [shape: f32[1,128], index: 12, kind: input, shape index: {}]   ;;  %s2011_s13 = inlined_call_operand.vmem [shape: f32[1,128], index: 13, kind: input, shape index: {}]   ;;  %s2012_s14 = inlined_call_operand.hbm [shape: bf16[128,128], index: 14, kind: input, shape index: {}]   ;;  %s2013_s15 = inlined_call_operand.vmem [shape: f32[1,128], index: 15, kind: input, shape index: {}]   ;;  %s2014_s16 = inlined_call_operand.hbm [shape: bf16[128,128], index: 16, kind: input, shape index: {}]   ;;  %s2015_s17 = inlined_call_operand.vmem [shape: f32[1,128], index: 17, kind: input, shape index: {}]   ;;  %s2016_s18 = inlined_call_operand.vmem [shape: f32[64,128], index: 18, kind: output, shape index: {}]  }
   0x1   :  { %2020 = sst [smem:[#allocation13_spill]] %s1998_s0 }
   0x2   :  { %2021 = sst [smem:[#allocation14_spill]] %s1999_s1 }
   0x3   :  { %2022 = sst [smem:[#allocation15_spill]] %s2000_s2 }
   0x4   :  { %2023 = sst [smem:[#allocation16_spill]] %s2016_s18 }
   0x5   :  { %23 = vsyncpa [#allocation3], 0 }
   0x6   :  { %24 = vsyncpa [#allocation5], 0 }
   0x7   :  { %25 = vsyncpa [#allocation8], 0  ;;  %s57_s29 = sshll.u32 %s2006_s8, 4  ;;  %s1650_s30 = smov [#allocation4]   ;;  %s58_s29 = int_to_ptr.hbm [resolvable:$true] %s57_s29 }
   0x8   :  { %s59_s0 = sshll.u32 %s1650_s30, 4  ;;  %s91_s20 = sshll.u32 %s2012_s14, 4  ;;  %s60_s0 = int_to_ptr.vmem [resolvable:$true] %s59_s0  ;;  %s92_s20 = int_to_ptr.hbm [resolvable:$true] %s91_s20 }
   0x9   :  { %s1651_s21 = smov 64   ;;  %s1652_s22 = smov 4  }
   0xa   :  { %65 = dma.hbm_to_vmem [thread:$0]  %s58_s29, 1024, %s60_s0, [#allocation5], %s1651_s21, %s1651_s21, %s1652_s22  }
   0xb   :  { %s1653_s2 = smov [#allocation7]   ;;  %s2024_s26 = sld [smem:[#allocation13_spill]] }
   0xc   :  { %s93_s23 = sshll.u32 %s1653_s2, 4  ;;  %s72_s28 = sshll.u32 %s2008_s10, 4  ;;  %s94_s23 = int_to_ptr.vmem [resolvable:$true] %s93_s23  ;;  %s73_s28 = int_to_ptr.hbm [resolvable:$true] %s72_s28 }
   0xd   :  { %99 = dma.hbm_to_vmem [thread:$0]  %s92_s20, 1024, %s94_s23, [#allocation8], %s1651_s21, %s1651_s21, %s1652_s22  }
   0xe   :  { %s1654_s30 = smov [#allocation2]   ;;  %s1655_s14 = smov [#allocation6]  }
   0xf   :  { %s32_s19 = sshll.u32 %s1654_s30, 4  ;;  %s74_s29 = sshll.u32 %s1655_s14, 4  ;;  %s33_s19 = int_to_ptr.vmem [resolvable:$true] %s32_s19  ;;  %s75_s29 = int_to_ptr.vmem [resolvable:$true] %s74_s29 }
  0x10   :  { %s106_s2 = sshll.u32 %s2014_s16, 4  ;;  %s1656_s24 = smov [#allocation9]   ;;  %s107_s2 = int_to_ptr.hbm [resolvable:$true] %s106_s2 }
  0x11   :  { %s30_s18 = sshll.u32 %s2024_s26, 4  ;;  %s108_s20 = sshll.u32 %s1656_s24, 4  ;;  %s31_s18 = int_to_ptr.hbm [resolvable:$true] %s30_s18  ;;  %s109_s20 = int_to_ptr.vmem [resolvable:$true] %s108_s20 }
  0x12   :  { %38 = dma.hbm_to_vmem [thread:$0]  %s31_s18, 512, %s33_s19, [#allocation3], %s1651_s21, %s1651_s21, %s1652_s22  }
  0x13   :  { %80 = dma.hbm_to_vmem [thread:$0]  %s73_s28, 1024, %s75_s29, [#allocation5], %s1651_s21, %s1651_s21, %s1652_s22  }
  0x14   :  { %114 = dma.hbm_to_vmem [thread:$0]  %s107_s2, 1024, %s109_s20, [#allocation8], %s1651_s21, %s1651_s21, %s1652_s22  }
  0x15   :  { %1644 = dma.done.wait [#allocation3], 512  }
  0x16   :  { %1645 = vsyncadd [#allocation3], 4294966784 }
  0x17   :  { %1646 = dma.done.wait [#allocation5], 2048  }
  0x18   :  { %1647 = vsyncadd [#allocation5], 4294965248 }
  0x19   :  { %1648 = dma.done.wait [#allocation8], 2048  }
  0x1a   :  { %1649 = vsyncadd [#allocation8], 4294965248  ;;  %s2025_s23 = sld [smem:[#allocation14_spill]]  ;;  %v1780_v4 = vld [vmem:[#allocation2] sm:$0xff]  ;;  %vm234_vm0 = vcmask 523264   ;;  %v1784_v5 = vld [vmem:[#allocation2 + $0x8] sm:$0xff] }
  0x1b   :  { %s2026_s30 = sld [smem:[#allocation15_spill]]  ;;  %v1800_v10 = vld [vmem:[#allocation2 + $0x10] sm:$0xff]  ;;  %v1807_v12 = vld [vmem:[#allocation2 + $0x18] sm:$0xff]  ;;  %v1437_v25 = vld [vmem:[%s2002_s4 + $0x28] sm:$0xff] }
  0x1c   :  { %v1439_v22 = vld [vmem:[%s2002_s4 + $0x38] sm:$0xff]  ;;  %v1438_v23 = vld [vmem:[%s2002_s4 + $0x30] sm:$0xff]  ;;  %v1436_v26 = vld [vmem:[%s2002_s4 + $0x20] sm:$0xff]  ;;  %s2027_s14 = sld [smem:[#allocation16_spill]] }
  0x1d   :  { %423 = vmatpush.bf16.msra.mxu2 %v1439_v22  ;;  %v1435_v32 = vld [vmem:[%s2002_s4 + $0x18] sm:$0xff]  ;;  %v1434_v33 = vld [vmem:[%s2002_s4 + $0x10] sm:$0xff]  ;;  %v1433_v34 = vld [vmem:[%s2002_s4 + $0x8] sm:$0xff] }
  0x1e   :  { %v1432_v35 = vld [vmem:[%s2002_s4] sm:$0xff] }
  0x1f   :  { %v1480_v37 = vld [vmem:[%s2001_s3] ss:$0 sm:$0xff] }
  0x20   :  { %v1423_v0 = vld [vmem:[%s2025_s23 + $0x18] sm:$0xff]  ;;  %v1422_v1 = vld [vmem:[%s2025_s23 + $0x10] sm:$0xff]  ;;  %v1421_v2 = vld [vmem:[%s2025_s23 + $0x8] sm:$0xff] }
  0x21   :  { %251 = vmatpush.bf16.msra.mxu0 %v1423_v0  ;;  %v1420_v3 = vld [vmem:[%s2025_s23] sm:$0xff]  ;;  %v1431_v6 = vld [vmem:[%s2026_s30 + $0x38] sm:$0xff]  ;;  %v1430_v7 = vld [vmem:[%s2026_s30 + $0x30] sm:$0xff]  ;;  %424 = vmatpush.bf16.msra.mxu2 %v1438_v23  ;;  %v1657_v23 = vmov 64.0  }
  0x22   :  { %331 = vmatpush.bf16.msra.mxu1 %v1431_v6  ;;  %v1429_v8 = vld [vmem:[%s2026_s30 + $0x28] sm:$0xff]  ;;  %v1428_v9 = vld [vmem:[%s2026_s30 + $0x20] sm:$0xff]  ;;  %v1427_v11 = vld [vmem:[%s2026_s30 + $0x18] sm:$0xff]  ;;  %1486 = vrcp.f32 %v1657_v23 }
  0x23   :  { %v1426_v13 = vld [vmem:[%s2026_s30 + $0x10] sm:$0xff]  ;;  %v1425_v14 = vld [vmem:[%s2026_s30 + $0x8] sm:$0xff]  ;;  %v1424_v15 = vld [vmem:[%s2026_s30] sm:$0xff] }
  0x25   :  { %252 = vmatpush.bf16.msra.mxu0 %v1422_v1  ;;  %425 = vmatpush.bf16.msra.mxu2 %v1437_v25 }
  0x26   :  { %332 = vmatpush.bf16.msra.mxu1 %v1430_v7 }
  0x29   :  { %253 = vmatpush.bf16.msra.mxu0 %v1421_v2  ;;  %426 = vmatpush.bf16.msra.mxu2 %v1436_v26 }
  0x2a   :  { %333 = vmatpush.bf16.msra.mxu1 %v1429_v8  ;;  %v1481_v8 = vld [vmem:[%s2003_s5] ss:$0 sm:$0xff] }
  0x2d   :  { %254 = vmatpush.bf16.msra.mxu0 %v1420_v3  ;;  %427 = vmatpush.bf16.msra.mxu2 %v1435_v32 }
  0x2e   :  { %334 = vmatpush.bf16.msra.mxu1 %v1428_v9 }
  0x30   :  { %1216 = vmatmul.msk.bf16.vlgmr.msra.gmra.mxu0 %vm234_vm0, %v1780_v4 }
  0x31   :  { %428 = vmatpush.bf16.msra.mxu2 %v1434_v33 }
  0x32   :  { %335 = vmatpush.bf16.msra.mxu1 %v1427_v11 }
  0x35   :  { %429 = vmatpush.bf16.msra.mxu2 %v1433_v34  ;;  %v1487_v34 = vpop.eup %1486 }
  0x36   :  { %336 = vmatpush.bf16.msra.mxu1 %v1426_v13  ;;  %vm478_vm1 = vweird.f32 %v1487_v34 }
  0x39   :  { %430 = vmatpush.bf16.msra.mxu2 %v1432_v35 }
  0x3a   :  { %337 = vmatpush.bf16.msra.mxu1 %v1425_v14 }
  0x3e   :  { %338 = vmatpush.bf16.msra.mxu1 %v1424_v15 }
  0x40   :  { %1217 = vmatmul.msk.bf16.gmra.mxu0 %vm234_vm0, %v1784_v5 }
  0x50   :  { %1218 = vmatmul.msk.bf16.gmra.mxu0 %vm234_vm0, %v1800_v10 }
  0x60   :  { %1219 = vmatmul.msk.bf16.gmra.mxu0 %vm234_vm0, %v1807_v12 }
  0xad   :  { %v256_v16 = vpop.f32.mrf.mxu0 }
  0xb5   :  { %v258_v17 = vpop.f32.mrf.mxu0 }
  0xb6   :  { %v276_v18 = vpack.c.bf16 %v258_v17, %v256_v16 }
  0xb8   :  { %339 = vmatmul.bf16.vlgmr.msra.gmra.mxu1 %v276_v18 }
  0xbd   :  { %v261_v19 = vpop.f32.mrf.mxu0 }
  0xc5   :  { %v263_v20 = vpop.f32.mrf.mxu0 }
  0xc6   :  { %v277_v21 = vpack.c.bf16 %v263_v20, %v261_v19 }
  0xc8   :  { %344 = vmatmul.bf16.gmra.mxu1 %v277_v21 }
  0xcd   :  { %v266_v24 = vpop.f32.mrf.mxu0 }
  0xd5   :  { %v268_v27 = vpop.f32.mrf.mxu0 }
  0xd6   :  { %v278_v28 = vpack.c.bf16 %v268_v27, %v266_v24 }
  0xd8   :  { %349 = vmatmul.bf16.gmra.mxu1 %v278_v28 }
  0xdd   :  { %v271_v29 = vpop.f32.mrf.mxu0 }
  0xe5   :  { %v273_v30 = vpop.f32.mrf.mxu0 }
  0xe6   :  { %v279_v31 = vpack.c.bf16 %v273_v30, %v271_v29 }
  0xe8   :  { %354 = vmatmul.bf16.gmra.mxu1 %v279_v31 }
 0x135   :  { %v340_v36 = vpop.f32.mrf.mxu1 }
 0x136   :  { %v341_v38 = vadd.f32 %v1480_v37, %v340_v36 }
 0x138   :  { %v360_v41 = vmax.f32 %v341_v38, 0.0 }
 0x13d   :  { %v342_v39 = vpop.f32.mrf.mxu1 }
 0x13e   :  { %v343_v40 = vadd.f32 %v1480_v37, %v342_v39 }
 0x140   :  { %v361_v42 = vmax.f32 %v343_v40, 0.0 }
 0x142   :  { %v368_v43 = vpack.c.bf16 %v361_v42, %v360_v41 }
 0x144   :  { %431 = vmatmul.bf16.vlgmr.msra.gmra.mxu2 %v368_v43  ;;  %v474_v43 = vmul.f32 64.0, %v1487_v34 }
 0x145   :  { %v345_v44 = vpop.f32.mrf.mxu1 }
 0x146   :  { %v346_v45 = vadd.f32 %v1480_v37, %v345_v44 }
 0x148   :  { %v362_v48 = vmax.f32 %v346_v45, 0.0 }
 0x14d   :  { %v347_v46 = vpop.f32.mrf.mxu1 }
 0x14e   :  { %v348_v47 = vadd.f32 %v1480_v37, %v347_v46 }
 0x150   :  { %v363_v49 = vmax.f32 %v348_v47, 0.0 }
 0x152   :  { %v369_v50 = vpack.c.bf16 %v363_v49, %v362_v48 }
 0x154   :  { %436 = vmatmul.bf16.gmra.mxu2 %v369_v50 }
 0x155   :  { %v350_v51 = vpop.f32.mrf.mxu1 }
 0x156   :  { %v351_v52 = vadd.f32 %v1480_v37, %v350_v51  ;;  %v475_v51 = vsub.f32 1.0, %v474_v43 }
 0x158   :  { %v364_v55 = vmax.f32 %v351_v52, 0.0 }
 0x15d   :  { %v352_v53 = vpop.f32.mrf.mxu1 }
 0x15e   :  { %v353_v54 = vadd.f32 %v1480_v37, %v352_v53 }
 0x160   :  { %v365_v56 = vmax.f32 %v353_v54, 0.0 }
 0x162   :  { %v370_v57 = vpack.c.bf16 %v365_v56, %v364_v55 }
 0x164   :  { %441 = vmatmul.bf16.gmra.mxu2 %v370_v57  ;;  %v476_v57 = vmul.f32 %v1487_v34, %v475_v51 }
 0x165   :  { %v355_v58 = vpop.f32.mrf.mxu1 }
 0x166   :  { %v356_v59 = vadd.f32 %v1480_v37, %v355_v58 }
 0x168   :  { %v366_v62 = vmax.f32 %v356_v59, 0.0 }
 0x16d   :  { %v357_v60 = vpop.f32.mrf.mxu1 }
 0x16e   :  { %v358_v61 = vadd.f32 %v1480_v37, %v357_v60 }
 0x170   :  { %v367_v63 = vmax.f32 %v358_v61, 0.0 }
 0x172   :  { %v371_v0 = vpack.c.bf16 %v367_v63, %v366_v62  ;;  %v477_v62 = vadd.f32 %v1487_v34, %v476_v57 }
 0x174   :  { %446 = vmatmul.bf16.gmra.mxu2 %v371_v0 }
 0x1c7   :  { %v432_v1 = vpop.f32.mrf.mxu2 }
 0x1c8   :  { %v433_v11 = vadd.f32 %v1481_v8, %v432_v1 }
 0x1ca   :  { %v1852_v17 = vmax.f32 %v433_v11, 0.0 }
 0x1cc   :  { %v481_v24 = vmul.f32 %v1852_v17, %v1852_v17 }
 0x1cf   :  { %v434_v2 = vpop.f32.mrf.mxu2 }
 0x1d0   :  { %v435_v9 = vadd.f32 %v1481_v8, %v434_v2 }
 0x1d2   :  { %v1850_v15 = vmax.f32 %v435_v9, 0.0 }
 0x1d4   :  { %v482_v20 = vmul.f32 %v1850_v15, %v1850_v15  ;;  %v460_v26 = vadd.f32 %v1850_v15, %v1852_v17 }
 0x1d6   :  { %v489_v30 = vadd.f32 %v482_v20, %v481_v24 }
 0x1d7   :  { %v437_v3 = vpop.f32.mrf.mxu2 }
 0x1d8   :  { %v438_v14 = vadd.f32 %v1481_v8, %v437_v3  ;;  %v1880_v3 = vsel %vm478_vm1, %v1487_v34, %v477_v62  ;;  %v1455_v62 = vld [vmem:[#allocation6 + $0x38] sm:$0xff] }
 0x1da   :  { %v1854_v18 = vmax.f32 %v438_v14, 0.0 }
 0x1dc   :  { %v483_v27 = vmul.f32 %v1854_v18, %v1854_v18  ;;  %v461_v31 = vadd.f32 %v460_v26, %v1854_v18 }
 0x1de   :  { %v490_v35 = vadd.f32 %v489_v30, %v483_v27  ;;  %v189_v30 = vld [vmem:[%s2005_s7] sm:$0x1] }
 0x1df   :  { %v439_v6 = vpop.f32.mrf.mxu2 }
 0x1e0   :  { %v440_v16 = vadd.f32 %v1481_v8, %v439_v6 }
 0x1e2   :  { %v1858_v21 = vmax.f32 %v440_v16, 0.0 }
 0x1e4   :  { %v484_v32 = vmul.f32 %v1858_v21, %v1858_v21  ;;  %v462_v36 = vadd.f32 %v461_v31, %v1858_v21 }
 0x1e6   :  { %v491_v39 = vadd.f32 %v490_v35, %v484_v32 }
 0x1e7   :  { %v442_v7 = vpop.f32.mrf.mxu2 }
 0x1e8   :  { %v443_v19 = vadd.f32 %v1481_v8, %v442_v7 }
 0x1ea   :  { %v1866_v28 = vmax.f32 %v443_v19, 0.0 }
 0x1ec   :  { %v485_v37 = vmul.f32 %v1866_v28, %v1866_v28  ;;  %v463_v40 = vadd.f32 %v462_v36, %v1866_v28 }
 0x1ee   :  { %v492_v44 = vadd.f32 %v491_v39, %v485_v37 }
 0x1ef   :  { %v444_v13 = vpop.f32.mrf.mxu2 }
 0x1f0   :  { %v445_v22 = vadd.f32 %v1481_v8, %v444_v13 }
 0x1f2   :  { %v1871_v33 = vmax.f32 %v445_v22, 0.0 }
 0x1f4   :  { %v486_v41 = vmul.f32 %v1871_v33, %v1871_v33  ;;  %v464_v45 = vadd.f32 %v463_v40, %v1871_v33 }
 0x1f6   :  { %v493_v48 = vadd.f32 %v492_v44, %v486_v41 }
 0x1f7   :  { %v447_v25 = vpop.f32.mrf.mxu2 }
 0x1f8   :  { %v448_v29 = vadd.f32 %v1481_v8, %v447_v25  ;;  %v188_v25 = vld [vmem:[%s2004_s6] sm:$0x1] }
 0x1fa   :  { %v458_v38 = vmax.f32 %v448_v29, 0.0 }
 0x1fc   :  { %v487_v46 = vmul.f32 %v458_v38, %v458_v38  ;;  %v465_v49 = vadd.f32 %v464_v45, %v458_v38 }
 0x1fe   :  { %v494_v52 = vadd.f32 %v493_v48, %v487_v46 }
 0x1ff   :  { %v449_v42 = vpop.f32.mrf.mxu2 }
 0x200   :  { %v450_v47 = vadd.f32 %v1481_v8, %v449_v42 }
 0x202   :  { %v459_v50 = vmax.f32 %v450_v47, 0.0 }
 0x204   :  { %v466_v53 = vadd.f32 %v465_v49, %v459_v50  ;;  %v488_v54 = vmul.f32 %v459_v50, %v459_v50 }
 0x206   :  { %v467_v55 = vrot.slane %v466_v53, 4  ;;  %v495_v56 = vadd.f32 %v494_v52, %v488_v54  ;;  %v1445_v54 = vld [vmem:[#allocation4 + $0x28] sm:$0xff] }
 0x208   :  { %v468_v58 = vadd.f32 %v467_v55, %v466_v53  ;;  %v496_v59 = vrot.slane %v495_v56, 4  ;;  %v1442_v55 = vld [vmem:[#allocation4 + $0x10] sm:$0xff] }
 0x20a   :  { %v469_v60 = vrot.slane %v468_v58, 2  ;;  %v497_v61 = vadd.f32 %v496_v59, %v495_v56  ;;  %v1441_v56 = vld [vmem:[#allocation4 + $0x8] sm:$0xff] }
 0x20c   :  { %v470_v63 = vadd.f32 %v469_v60, %v468_v58  ;;  %v498_v0 = vrot.slane %v497_v61, 2 }
 0x20e   :  { %v471_v1 = vrot.slane %v470_v63, 1  ;;  %v499_v2 = vadd.f32 %v498_v0, %v497_v61  ;;  %v1453_v0 = vld [vmem:[#allocation6 + $0x28] sm:$0xff] }
 0x210   :  { %v472_v6 = vadd.f32 %v471_v1, %v470_v63  ;;  %v500_v7 = vrot.slane %v499_v2, 1  ;;  %v1452_v1 = vld [vmem:[#allocation6 + $0x20] sm:$0xff] }
 0x212   :  { %v480_v8 = vmul.f32 %v1880_v3, %v472_v6  ;;  %v501_v9 = vadd.f32 %v500_v7, %v499_v2  ;;  %v1451_v6 = vld [vmem:[#allocation6 + $0x18] sm:$0xff]  ;;  %v1450_v7 = vld [vmem:[#allocation6 + $0x10] sm:$0xff] }
 0x214   :  { %v502_v11 = vmul.f32 %v501_v9, %v1880_v3  ;;  %v503_v13 = vmul.f32 %v480_v8, %v480_v8  ;;  %v1449_v9 = vld [vmem:[#allocation6 + $0x8] sm:$0xff] }
 0x216   :  { %v504_v14 = vsub.f32 %v502_v11, %v503_v13 }
 0x218   :  { %v505_v16 = vadd.f32 1e-05, %v504_v14  ;;  %v1448_v14 = vld [vmem:[#allocation6] sm:$0xff] }
 0x21a   :  { %1488 = vrsqrt.f32 %v505_v16  ;;  %vm512_vm3 = vweird.f32 %v505_v16 }
 0x220   :  { %v1489_v19 = vpop.eup %1488 }
 0x221   :  { %v507_v20 = vmul.f32 %v1489_v19, %v505_v16  ;;  %vm513_vm2 = vweird.f32 %v1489_v19 }
 0x222   :  { %vm514_vm4 = vmor %vm512_vm3, %vm513_vm2 }
 0x223   :  { %v508_v22 = vmul.f32 %v1489_v19, %v507_v20 }
 0x225   :  { %v509_v23 = vmul.f32 0.5, %v508_v22 }
 0x227   :  { %v510_v24 = vsub.f32 1.5, %v509_v23 }
 0x229   :  { %v511_v26 = vmul.f32 %v1489_v19, %v510_v24 }
 0x22b   :  { %v515_v27 = vsel %vm514_vm4, %v1489_v19, %v511_v26  ;;  %v1482_v19 = vld [vmem:[%s2007_s9] ss:$0 sm:$0xff] }
 0x22c   :  { %v516_v29 = vmul.f32 %v515_v27, %v188_v25 }
 0x22e   :  { %v517_v31 = vmul.f32 %v516_v29, %v480_v8  ;;  %v520_v32 = vperm.slane %v516_v29, 0 }
 0x230   :  { %v518_v34 = vsub.f32 %v189_v30, %v517_v31  ;;  %v528_v36 = vmul.f32 %v520_v32, %v458_v38  ;;  %v529_v37 = vmul.f32 %v520_v32, %v459_v50  ;;  %v526_v41 = vmul.f32 %v520_v32, %v1866_v28 }
 0x231   :  { %v527_v42 = vmul.f32 %v520_v32, %v1871_v33  ;;  %v524_v46 = vmul.f32 %v520_v32, %v1854_v18  ;;  %v525_v47 = vmul.f32 %v520_v32, %v1858_v21  ;;  %v522_v38 = vmul.f32 %v520_v32, %v1852_v17  ;;  %v1447_v18 = vld [vmem:[#allocation4 + $0x38] sm:$0xff]  ;;  %v1446_v21 = vld [vmem:[#allocation4 + $0x30] sm:$0xff]  ;;  %v1444_v17 = vld [vmem:[#allocation4 + $0x20] sm:$0xff] }
 0x232   :  { %v531_v35 = vperm.slane %v518_v34, 0  ;;  %v523_v50 = vmul.f32 %v520_v32, %v1850_v15  ;;  %665 = vmatpush.bf16.msrb.mxu0 %v1447_v18  ;;  %v1443_v15 = vld [vmem:[#allocation4 + $0x18] sm:$0xff]  ;;  %v1483_v18 = vld [vmem:[%s2009_s11] ss:$0 sm:$0xff] }
 0x234   :  { %v539_v39 = vadd.f32 %v531_v35, %v528_v36  ;;  %v540_v40 = vadd.f32 %v531_v35, %v529_v37  ;;  %v537_v44 = vadd.f32 %v531_v35, %v526_v41  ;;  %v538_v45 = vadd.f32 %v531_v35, %v527_v42 }
 0x235   :  { %v535_v49 = vadd.f32 %v531_v35, %v524_v46  ;;  %v536_v51 = vadd.f32 %v531_v35, %v525_v47  ;;  %v533_v28 = vadd.f32 %v531_v35, %v522_v38  ;;  %v534_v53 = vadd.f32 %v531_v35, %v523_v50 }
 0x236   :  { %v544_v43 = vpack.c.bf16 %v540_v40, %v539_v39  ;;  %v543_v48 = vpack.c.bf16 %v538_v45, %v537_v44  ;;  %666 = vmatpush.bf16.msrb.mxu0 %v1446_v21 }
 0x237   :  { %v542_v52 = vpack.c.bf16 %v536_v51, %v535_v49  ;;  %v541_v33 = vpack.c.bf16 %v534_v53, %v533_v28  ;;  %v1463_v28 = vld [vmem:[#allocation7 + $0x38] sm:$0xff] }
 0x238   :  { %585 = vmatpush.bf16.msra.mxu3 %v544_v43  ;;  %957 = vmatpush.bf16.msrb.mxu1 %v1463_v28 }
 0x23a   :  { %667 = vmatpush.bf16.msrb.mxu0 %v1445_v54 }
 0x23c   :  { %586 = vmatpush.bf16.msra.mxu3 %v543_v48 }
 0x23e   :  { %668 = vmatpush.bf16.msrb.mxu0 %v1444_v17 }
 0x240   :  { %587 = vmatpush.bf16.msra.mxu3 %v542_v52 }
 0x242   :  { %669 = vmatpush.bf16.msrb.mxu0 %v1443_v15 }
 0x244   :  { %588 = vmatpush.bf16.msra.mxu3 %v541_v33 }
 0x246   :  { %670 = vmatpush.bf16.msrb.mxu0 %v1442_v55 }
 0x247   :  { %1284 = vmatmul.msk.bf16.vlgmr.msra.gmra.mxu3 %vm234_vm0, %v1780_v4  ;;  %v1440_v4 = vld [vmem:[#allocation4] sm:$0xff] }
 0x248   :  { %757 = vmatpush.bf16.msrb.mxu3 %v1455_v62 }
 0x24a   :  { %671 = vmatpush.bf16.msrb.mxu0 %v1441_v56 }
 0x24e   :  { %672 = vmatpush.bf16.msrb.mxu0 %v1440_v4 }
 0x257   :  { %1285 = vmatmul.msk.bf16.gmra.mxu3 %vm234_vm0, %v1784_v5 }
 0x267   :  { %1286 = vmatmul.msk.bf16.gmra.mxu3 %vm234_vm0, %v1800_v10  ;;  %v1454_v10 = vld [vmem:[#allocation6 + $0x30] sm:$0xff] }
 0x268   :  { %758 = vmatpush.bf16.msrb.mxu3 %v1454_v10 }
 0x26c   :  { %759 = vmatpush.bf16.msrb.mxu3 %v1453_v0 }
 0x270   :  { %760 = vmatpush.bf16.msrb.mxu3 %v1452_v1 }
 0x274   :  { %761 = vmatpush.bf16.msrb.mxu3 %v1451_v6 }
 0x277   :  { %1287 = vmatmul.msk.bf16.gmra.mxu3 %vm234_vm0, %v1807_v12 }
 0x278   :  { %762 = vmatpush.bf16.msrb.mxu3 %v1450_v7 }
 0x27c   :  { %763 = vmatpush.bf16.msrb.mxu3 %v1449_v9 }
 0x280   :  { %764 = vmatpush.bf16.msrb.mxu3 %v1448_v14  ;;  %v1462_v14 = vld [vmem:[#allocation7 + $0x30] sm:$0xff] }
 0x281   :  { %958 = vmatpush.bf16.msrb.mxu1 %v1462_v14 }
 0x2ca   :  { %v590_v5 = vpop.f32.mrf.mxu3 }
 0x2d2   :  { %v592_v57 = vpop.f32.mrf.mxu3 }
 0x2d3   :  { %v610_v58 = vpack.c.bf16 %v592_v57, %v590_v5 }
 0x2d5   :  { %673 = vmatmul.bf16.vlgmr.msrb.gmra.mxu0 %v610_v58 }
 0x2da   :  { %v595_v59 = vpop.f32.mrf.mxu3 }
 0x2e2   :  { %v597_v60 = vpop.f32.mrf.mxu3 }
 0x2e3   :  { %v611_v61 = vpack.c.bf16 %v597_v60, %v595_v59 }
 0x2e5   :  { %678 = vmatmul.bf16.gmra.mxu0 %v611_v61 }
 0x2ea   :  { %v600_v63 = vpop.f32.mrf.mxu3 }
 0x2f2   :  { %v602_v2 = vpop.f32.mrf.mxu3 }
 0x2f3   :  { %v612_v12 = vpack.c.bf16 %v602_v2, %v600_v63 }
 0x2f5   :  { %683 = vmatmul.bf16.gmra.mxu0 %v612_v12 }
 0x2fa   :  { %v605_v8 = vpop.f32.mrf.mxu3 }
 0x302   :  { %v607_v11 = vpop.f32.mrf.mxu3 }
 0x303   :  { %v613_v13 = vpack.c.bf16 %v607_v11, %v605_v8 }
 0x305   :  { %688 = vmatmul.bf16.gmra.mxu0 %v613_v13 }
 0x352   :  { %v674_v16 = vpop.f32.mrf.mxu0 }
 0x353   :  { %v675_v20 = vadd.f32 %v1482_v19, %v674_v16 }
 0x355   :  { %v694_v24 = vmax.f32 %v675_v20, 0.0 }
 0x35a   :  { %v676_v22 = vpop.f32.mrf.mxu0 }
 0x35b   :  { %v677_v23 = vadd.f32 %v1482_v19, %v676_v22 }
 0x35d   :  { %v695_v25 = vmax.f32 %v677_v23, 0.0 }
 0x35f   :  { %v702_v26 = vpack.c.bf16 %v695_v25, %v694_v24 }
 0x361   :  { %765 = vmatmul.bf16.vlgmr.msrb.gmra.mxu3 %v702_v26 }
 0x362   :  { %v679_v27 = vpop.f32.mrf.mxu0 }
 0x363   :  { %v680_v29 = vadd.f32 %v1482_v19, %v679_v27  ;;  %v1461_v27 = vld [vmem:[#allocation7 + $0x28] sm:$0xff] }
 0x364   :  { %959 = vmatpush.bf16.msrb.mxu1 %v1461_v27 }
 0x365   :  { %v696_v32 = vmax.f32 %v680_v29, 0.0 }
 0x36a   :  { %v681_v30 = vpop.f32.mrf.mxu0 }
 0x36b   :  { %v682_v31 = vadd.f32 %v1482_v19, %v681_v30 }
 0x36d   :  { %v697_v34 = vmax.f32 %v682_v31, 0.0 }
 0x36f   :  { %v703_v35 = vpack.c.bf16 %v697_v34, %v696_v32 }
 0x371   :  { %770 = vmatmul.bf16.gmra.mxu3 %v703_v35 }
 0x372   :  { %v684_v36 = vpop.f32.mrf.mxu0 }
 0x373   :  { %v685_v37 = vadd.f32 %v1482_v19, %v684_v36  ;;  %v1460_v36 = vld [vmem:[#allocation7 + $0x20] sm:$0xff] }
 0x374   :  { %960 = vmatpush.bf16.msrb.mxu1 %v1460_v36  ;;  %v1466_v36 = vld [vmem:[#allocation9 + $0x10] sm:$0xff] }
 0x375   :  { %v698_v41 = vmax.f32 %v685_v37, 0.0 }
 0x37a   :  { %v686_v39 = vpop.f32.mrf.mxu0 }
 0x37b   :  { %v687_v40 = vadd.f32 %v1482_v19, %v686_v39 }
 0x37d   :  { %v699_v42 = vmax.f32 %v687_v40, 0.0 }
 0x37f   :  { %v704_v43 = vpack.c.bf16 %v699_v42, %v698_v41  ;;  %v1459_v42 = vld [vmem:[#allocation7 + $0x18] sm:$0xff] }
 0x380   :  { %961 = vmatpush.bf16.msrb.mxu1 %v1459_v42 }
 0x381   :  { %775 = vmatmul.bf16.gmra.mxu3 %v704_v43 }
 0x382   :  { %v689_v44 = vpop.f32.mrf.mxu0 }
 0x383   :  { %v690_v45 = vadd.f32 %v1482_v19, %v689_v44 }
 0x385   :  { %v700_v48 = vmax.f32 %v690_v45, 0.0 }
 0x38a   :  { %v691_v46 = vpop.f32.mrf.mxu0 }
 0x38b   :  { %v692_v47 = vadd.f32 %v1482_v19, %v691_v46 }
 0x38d   :  { %v701_v49 = vmax.f32 %v692_v47, 0.0  ;;  %v1458_v47 = vld [vmem:[#allocation7 + $0x10] sm:$0xff] }
 0x38e   :  { %962 = vmatpush.bf16.msrb.mxu1 %v1458_v47 }
 0x38f   :  { %v705_v51 = vpack.c.bf16 %v701_v49, %v700_v48 }
 0x391   :  { %780 = vmatmul.bf16.gmra.mxu3 %v705_v51 }
 0x3e4   :  { %v766_v38 = vpop.f32.mrf.mxu3 }
 0x3e5   :  { %v767_v54 = vadd.f32 %v1483_v18, %v766_v38 }
 0x3e7   :  { %v1912_v4 = vmax.f32 %v767_v54, 0.0 }
 0x3e9   :  { %v808_v61 = vmul.f32 %v1912_v4, %v1912_v4 }
 0x3ec   :  { %v768_v50 = vpop.f32.mrf.mxu3 }
 0x3ed   :  { %v769_v21 = vadd.f32 %v1483_v18, %v768_v50  ;;  %v1457_v50 = vld [vmem:[#allocation7 + $0x8] sm:$0xff] }
 0x3ee   :  { %963 = vmatpush.bf16.msrb.mxu1 %v1457_v50 }
 0x3ef   :  { %v1910_v55 = vmax.f32 %v769_v21, 0.0 }
 0x3f1   :  { %v809_v58 = vmul.f32 %v1910_v55, %v1910_v55  ;;  %v794_v10 = vadd.f32 %v1910_v55, %v1912_v4 }
 0x3f3   :  { %v816_v2 = vadd.f32 %v809_v58, %v808_v61 }
 0x3f4   :  { %v771_v52 = vpop.f32.mrf.mxu3 }
 0x3f5   :  { %v772_v15 = vadd.f32 %v1483_v18, %v771_v52 }
 0x3f7   :  { %v1914_v5 = vmax.f32 %v772_v15, 0.0 }
 0x3f9   :  { %v810_v63 = vmul.f32 %v1914_v5, %v1914_v5  ;;  %v795_v12 = vadd.f32 %v794_v10, %v1914_v5  ;;  %v580_v10 = vld [vmem:[%s2011_s13] sm:$0x1] }
 0x3fb   :  { %v817_v8 = vadd.f32 %v816_v2, %v810_v63 }
 0x3fc   :  { %v773_v53 = vpop.f32.mrf.mxu3 }
 0x3fd   :  { %v774_v56 = vadd.f32 %v1483_v18, %v773_v53  ;;  %v1456_v53 = vld [vmem:[#allocation7] sm:$0xff] }
 0x3fe   :  { %964 = vmatpush.bf16.msrb.mxu1 %v1456_v53 }
 0x3ff   :  { %v1918_v59 = vmax.f32 %v774_v56, 0.0 }
 0x401   :  { %v811_v6 = vmul.f32 %v1918_v59, %v1918_v59  ;;  %v796_v9 = vadd.f32 %v795_v12, %v1918_v59 }
 0x403   :  { %v818_v16 = vadd.f32 %v817_v8, %v811_v6 }
 0x404   :  { %v776_v33 = vpop.f32.mrf.mxu3 }
 0x405   :  { %v777_v57 = vadd.f32 %v1483_v18, %v776_v33 }
 0x407   :  { %v1926_v0 = vmax.f32 %v777_v57, 0.0 }
 0x409   :  { %v812_v11 = vmul.f32 %v1926_v0, %v1926_v0  ;;  %v797_v19 = vadd.f32 %v796_v9, %v1926_v0 }
 0x40b   :  { %v819_v23 = vadd.f32 %v818_v16, %v812_v11 }
 0x40c   :  { %v778_v17 = vpop.f32.mrf.mxu3 }
 0x40d   :  { %v779_v60 = vadd.f32 %v1483_v18, %v778_v17 }
 0x40f   :  { %v1931_v7 = vmax.f32 %v779_v60, 0.0  ;;  %v579_v60 = vld [vmem:[%s2010_s12] sm:$0x1] }
 0x411   :  { %v813_v20 = vmul.f32 %v1931_v7, %v1931_v7  ;;  %v798_v24 = vadd.f32 %v797_v19, %v1931_v7 }
 0x413   :  { %v820_v29 = vadd.f32 %v819_v23, %v813_v20 }
 0x414   :  { %v781_v62 = vpop.f32.mrf.mxu3 }
 0x415   :  { %v782_v1 = vadd.f32 %v1483_v18, %v781_v62 }
 0x417   :  { %v1936_v13 = vmax.f32 %v782_v1, 0.0 }
 0x419   :  { %v814_v25 = vmul.f32 %v1936_v13, %v1936_v13  ;;  %v799_v30 = vadd.f32 %v798_v24, %v1936_v13 }
 0x41b   :  { %v821_v32 = vadd.f32 %v820_v29, %v814_v25 }
 0x41c   :  { %v783_v22 = vpop.f32.mrf.mxu3 }
 0x41d   :  { %v784_v26 = vadd.f32 %v1483_v18, %v783_v22 }
 0x41f   :  { %v793_v31 = vmax.f32 %v784_v26, 0.0 }
 0x421   :  { %v800_v34 = vadd.f32 %v799_v30, %v793_v31  ;;  %v815_v35 = vmul.f32 %v793_v31, %v793_v31 }
 0x423   :  { %v801_v37 = vrot.slane %v800_v34, 4  ;;  %v822_v39 = vadd.f32 %v821_v32, %v815_v35  ;;  %v1468_v35 = vld [vmem:[#allocation9 + $0x20] sm:$0xff] }
 0x425   :  { %v802_v40 = vadd.f32 %v801_v37, %v800_v34  ;;  %v823_v41 = vrot.slane %v822_v39, 4  ;;  %v1465_v37 = vld [vmem:[#allocation9 + $0x8] sm:$0xff] }
 0x427   :  { %v803_v43 = vrot.slane %v802_v40, 2  ;;  %v824_v44 = vadd.f32 %v823_v41, %v822_v39  ;;  %v1464_v39 = vld [vmem:[#allocation9] sm:$0xff] }
 0x429   :  { %v804_v45 = vadd.f32 %v803_v43, %v802_v40  ;;  %v825_v46 = vrot.slane %v824_v44, 2 }
 0x42b   :  { %v805_v48 = vrot.slane %v804_v45, 1  ;;  %v826_v49 = vadd.f32 %v825_v46, %v824_v44 }
 0x42d   :  { %v806_v51 = vadd.f32 %v805_v48, %v804_v45  ;;  %v827_v38 = vrot.slane %v826_v49, 1 }
 0x42f   :  { %v807_v52 = vmul.f32 %v806_v51, %v1880_v3  ;;  %v828_v28 = vadd.f32 %v827_v38, %v826_v49 }
 0x431   :  { %v829_v33 = vmul.f32 %v828_v28, %v1880_v3  ;;  %v830_v18 = vmul.f32 %v807_v52, %v807_v52 }
 0x433   :  { %v831_v21 = vsub.f32 %v829_v33, %v830_v18 }
 0x435   :  { %v832_v54 = vadd.f32 1e-05, %v831_v21 }
 0x437   :  { %1490 = vrsqrt.f32 %v832_v54  ;;  %vm839_vm6 = vweird.f32 %v832_v54 }
 0x43d   :  { %v1491_v17 = vpop.eup %1490 }
 0x43e   :  { %v834_v15 = vmul.f32 %v1491_v17, %v832_v54  ;;  %vm840_vm5 = vweird.f32 %v1491_v17 }
 0x43f   :  { %vm841_vm7 = vmor %vm839_vm6, %vm840_vm5 }
 0x440   :  { %v835_v56 = vmul.f32 %v1491_v17, %v834_v15 }
 0x442   :  { %v836_v57 = vmul.f32 0.5, %v835_v56 }
 0x444   :  { %v837_v58 = vsub.f32 1.5, %v836_v57 }
 0x446   :  { %v838_v61 = vmul.f32 %v1491_v17, %v837_v58 }
 0x448   :  { %v842_v62 = vsel %vm841_vm7, %v1491_v17, %v838_v61 }
 0x449   :  { %v843_v3 = vmul.f32 %v842_v62, %v579_v60  ;;  %v1078_v62 = vlaneseq }
 0x44b   :  { %v844_v63 = vmul.f32 %v843_v3, %v807_v52  ;;  %v847_v1 = vperm.slane %v843_v3, 0  ;;  %v1079_v3 = vand.u32 127, %v1078_v62 }
 0x44d   :  { %v845_v2 = vsub.f32 %v580_v10, %v844_v63  ;;  %v849_v6 = vmul.f32 %v847_v1, %v1912_v4  ;;  %v850_v8 = vmul.f32 %v847_v1, %v1910_v55  ;;  %v855_v9 = vmul.f32 %v847_v1, %v1936_v13  ;;  %v1471_v4 = vld [vmem:[#allocation9 + $0x38] sm:$0xff]  ;;  %v1470_v55 = vld [vmem:[#allocation9 + $0x30] sm:$0xff]  ;;  %v1469_v13 = vld [vmem:[#allocation9 + $0x28] sm:$0xff] }
 0x44e   :  { %v856_v11 = vmul.f32 %v847_v1, %v793_v31  ;;  %v851_v24 = vmul.f32 %v847_v1, %v1914_v5  ;;  %v852_v25 = vmul.f32 %v847_v1, %v1918_v59  ;;  %1049 = vmatpush.bf16.msrb.mxu2 %v1471_v4  ;;  %v853_v30 = vmul.f32 %v847_v1, %v1926_v0  ;;  %v1467_v59 = vld [vmem:[#allocation9 + $0x18] sm:$0xff]  ;;  %v1484_v0 = vld [vmem:[%s2013_s15] ss:$0 sm:$0xff] }
 0x44f   :  { %v858_v12 = vperm.slane %v845_v2, 0  ;;  %v854_v31 = vmul.f32 %v847_v1, %v1931_v7  ;;  %v1485_v10 = vld [vmem:[%s2015_s17] ss:$0 sm:$0xff]  ;;  %vm1080_vm8 = vcmp.lt.s32.totalorder %v1079_v3, 8 }
 0x451   :  { %v860_v14 = vadd.f32 %v858_v12, %v849_v6  ;;  %v861_v16 = vadd.f32 %v858_v12, %v850_v8  ;;  %v866_v19 = vadd.f32 %v858_v12, %v855_v9  ;;  %v867_v20 = vadd.f32 %v858_v12, %v856_v11 }
 0x452   :  { %v862_v26 = vadd.f32 %v858_v12, %v851_v24  ;;  %v863_v27 = vadd.f32 %v858_v12, %v852_v25  ;;  %1050 = vmatpush.bf16.msrb.mxu2 %v1470_v55  ;;  %v864_v32 = vadd.f32 %v858_v12, %v853_v30  ;;  %v865_v34 = vadd.f32 %v858_v12, %v854_v31 }
 0x453   :  { %v868_v22 = vpack.c.bf16 %v861_v16, %v860_v14  ;;  %v871_v23 = vpack.c.bf16 %v867_v20, %v866_v19 }
 0x454   :  { %v869_v29 = vpack.c.bf16 %v863_v27, %v862_v26  ;;  %v870_v5 = vpack.c.bf16 %v865_v34, %v864_v32 }
 0x455   :  { %965 = vmatmul.bf16.vlgmr.msrb.gmra.mxu1 %v868_v22 }
 0x456   :  { %1051 = vmatpush.bf16.msrb.mxu2 %v1469_v13 }
 0x45a   :  { %1052 = vmatpush.bf16.msrb.mxu2 %v1468_v35 }
 0x45e   :  { %1053 = vmatpush.bf16.msrb.mxu2 %v1467_v59 }
 0x462   :  { %1054 = vmatpush.bf16.msrb.mxu2 %v1466_v36 }
 0x465   :  { %970 = vmatmul.bf16.gmra.mxu1 %v869_v29 }
 0x466   :  { %1055 = vmatpush.bf16.msrb.mxu2 %v1465_v37 }
 0x46a   :  { %1056 = vmatpush.bf16.msrb.mxu2 %v1464_v39 }
 0x475   :  { %975 = vmatmul.bf16.gmra.mxu1 %v870_v5 }
 0x485   :  { %980 = vmatmul.bf16.gmra.mxu1 %v871_v23 }
 0x4d2   :  { %v966_v40 = vpop.f32.mrf.mxu1 }
 0x4d3   :  { %v967_v7 = vadd.f32 %v1484_v0, %v966_v40 }
 0x4d5   :  { %v986_v43 = vmax.f32 %v967_v7, 0.0 }
 0x4da   :  { %v968_v41 = vpop.f32.mrf.mxu1 }
 0x4db   :  { %v969_v42 = vadd.f32 %v1484_v0, %v968_v41 }
 0x4dd   :  { %v987_v44 = vmax.f32 %v969_v42, 0.0 }
 0x4df   :  { %v994_v45 = vpack.c.bf16 %v987_v44, %v986_v43 }
 0x4e1   :  { %1057 = vmatmul.bf16.vlgmr.msrb.gmra.mxu2 %v994_v45 }
 0x4e2   :  { %v971_v46 = vpop.f32.mrf.mxu1 }
 0x4e3   :  { %v972_v47 = vadd.f32 %v1484_v0, %v971_v46 }
 0x4e5   :  { %v988_v51 = vmax.f32 %v972_v47, 0.0 }
 0x4ea   :  { %v973_v48 = vpop.f32.mrf.mxu1 }
 0x4eb   :  { %v974_v49 = vadd.f32 %v1484_v0, %v973_v48 }
 0x4ed   :  { %v989_v38 = vmax.f32 %v974_v49, 0.0 }
 0x4ef   :  { %v995_v50 = vpack.c.bf16 %v989_v38, %v988_v51 }
 0x4f1   :  { %1062 = vmatmul.bf16.gmra.mxu2 %v995_v50 }
 0x4f2   :  { %v976_v52 = vpop.f32.mrf.mxu1 }
 0x4f3   :  { %v977_v28 = vadd.f32 %v1484_v0, %v976_v52 }
 0x4f5   :  { %v990_v18 = vmax.f32 %v977_v28, 0.0 }
 0x4fa   :  { %v978_v53 = vpop.f32.mrf.mxu1 }
 0x4fb   :  { %v979_v33 = vadd.f32 %v1484_v0, %v978_v53 }
 0x4fd   :  { %v991_v21 = vmax.f32 %v979_v33, 0.0 }
 0x4ff   :  { %v996_v54 = vpack.c.bf16 %v991_v21, %v990_v18 }
 0x501   :  { %1067 = vmatmul.bf16.gmra.mxu2 %v996_v54 }
 0x502   :  { %v981_v17 = vpop.f32.mrf.mxu1 }
 0x503   :  { %v982_v15 = vadd.f32 %v1484_v0, %v981_v17 }
 0x505   :  { %v992_v58 = vmax.f32 %v982_v15, 0.0 }
 0x50a   :  { %v983_v56 = vpop.f32.mrf.mxu1 }
 0x50b   :  { %v984_v57 = vadd.f32 %v1484_v0, %v983_v56 }
 0x50d   :  { %v993_v60 = vmax.f32 %v984_v57, 0.0 }
 0x50f   :  { %v997_v61 = vpack.c.bf16 %v993_v60, %v992_v58 }
 0x511   :  { %1072 = vmatmul.bf16.gmra.mxu2 %v997_v61 }
 0x564   :  { %v1058_v63 = vpop.f32.mrf.mxu2 }
 0x565   :  { %v1059_v1 = vadd.f32 %v1485_v10, %v1058_v63 }
 0x567   :  { %v1081_v2 = vsel %vm1080_vm8, %v1059_v1, -1e+30 }
 0x568   :  { %1089 = vmax.xlane.f32.xlu0 %v1081_v2 }
 0x56c   :  { %v1060_v12 = vpop.f32.mrf.mxu2 }
 0x56d   :  { %v1061_v6 = vadd.f32 %v1485_v10, %v1060_v12 }
 0x56f   :  { %v1082_v8 = vsel %vm1080_vm8, %v1061_v6, -1e+30 }
 0x570   :  { %1091 = vmax.xlane.f32.xlu0 %v1082_v8 }
 0x574   :  { %v1063_v9 = vpop.f32.mrf.mxu2 }
 0x575   :  { %v1064_v11 = vadd.f32 %v1485_v10, %v1063_v9 }
 0x577   :  { %v1083_v14 = vsel %vm1080_vm8, %v1064_v11, -1e+30 }
 0x578   :  { %1093 = vmax.xlane.f32.xlu1 %v1083_v14 }
 0x57c   :  { %v1065_v16 = vpop.f32.mrf.mxu2 }
 0x57d   :  { %v1066_v19 = vadd.f32 %v1485_v10, %v1065_v16 }
 0x57f   :  { %v1084_v20 = vsel %vm1080_vm8, %v1066_v19, -1e+30 }
 0x580   :  { %1095 = vmax.xlane.f32.xlu1 %v1084_v20 }
 0x584   :  { %v1068_v22 = vpop.f32.mrf.mxu2 }
 0x585   :  { %v1069_v23 = vadd.f32 %v1485_v10, %v1068_v22 }
 0x587   :  { %v1085_v24 = vsel %vm1080_vm8, %v1069_v23, -1e+30 }
 0x588   :  { %1097 = vmax.xlane.f32.xlu2 %v1085_v24 }
 0x58c   :  { %v1070_v25 = vpop.f32.mrf.mxu2 }
 0x58d   :  { %v1071_v26 = vadd.f32 %v1485_v10, %v1070_v25 }
 0x58f   :  { %v1086_v27 = vsel %vm1080_vm8, %v1071_v26, -1e+30 }
 0x590   :  { %1099 = vmax.xlane.f32.xlu2 %v1086_v27 }
 0x594   :  { %v1073_v29 = vpop.f32.mrf.mxu2 }
 0x595   :  { %v1074_v4 = vadd.f32 %v1485_v10, %v1073_v29 }
 0x597   :  { %v1087_v55 = vsel %vm1080_vm8, %v1074_v4, -1e+30 }
 0x598   :  { %1101 = vmax.xlane.f32.xlu0 %v1087_v55 }
 0x59c   :  { %v1075_v13 = vpop.f32.mrf.mxu2 }
 0x59d   :  { %v1076_v30 = vadd.f32 %v1485_v10, %v1075_v13 }
 0x59f   :  { %v1088_v31 = vsel %vm1080_vm8, %v1076_v30, -1e+30 }
 0x5a0   :  { %1103 = vmax.xlane.f32.xlu1 %v1088_v31 }
 0x5db   :  { %v1090_v32 = vpop.xlane.xlu0 %1089 }
 0x5dc   :  { %v1105_v34 = vsub.f32 %v1081_v2, %v1090_v32 }
 0x5de   :  { %v1113_v35 = vmul.f32 1.442695, %v1105_v34 }
 0x5e0   :  { %1492 = vpow2.f32 %v1113_v35 }
 0x5e3   :  { %v1092_v5 = vpop.xlane.xlu0 %1091 }
 0x5e4   :  { %v1106_v59 = vsub.f32 %v1082_v8, %v1092_v5 }
 0x5e6   :  { %v1493_v36 = vpop.eup %1492  ;;  %v1115_v37 = vmul.f32 1.442695, %v1106_v59 }
 0x5e7   :  { %1129 = vadd.xlane.f32.xlu2 %v1493_v36 }
 0x5e8   :  { %1494 = vpow2.f32 %v1115_v37 }
 0x5eb   :  { %v1094_v39 = vpop.xlane.xlu1 %1093 }
 0x5ec   :  { %v1107_v40 = vsub.f32 %v1083_v14, %v1094_v39 }
 0x5ee   :  { %v1495_v0 = vpop.eup %1494  ;;  %v1117_v7 = vmul.f32 1.442695, %v1107_v40 }
 0x5ef   :  { %1131 = vadd.xlane.f32.xlu0 %v1495_v0 }
 0x5f0   :  { %1496 = vpow2.f32 %v1117_v7 }
 0x5f3   :  { %v1096_v41 = vpop.xlane.xlu1 %1095 }
 0x5f4   :  { %v1108_v42 = vsub.f32 %v1084_v20, %v1096_v41 }
 0x5f6   :  { %v1497_v43 = vpop.eup %1496  ;;  %v1119_v44 = vmul.f32 1.442695, %v1108_v42 }
 0x5f7   :  { %1133 = vadd.xlane.f32.xlu1 %v1497_v43 }
 0x5f8   :  { %1498 = vpow2.f32 %v1119_v44 }
 0x5fb   :  { %v1098_v45 = vpop.xlane.xlu2 %1097 }
 0x5fc   :  { %v1109_v46 = vsub.f32 %v1085_v24, %v1098_v45 }
 0x5fe   :  { %v1499_v47 = vpop.eup %1498  ;;  %v1121_v48 = vmul.f32 1.442695, %v1109_v46 }
 0x5ff   :  { %1135 = vadd.xlane.f32.xlu2 %v1499_v47 }
 0x600   :  { %1500 = vpow2.f32 %v1121_v48 }
 0x603   :  { %v1100_v49 = vpop.xlane.xlu2 %1099 }
 0x604   :  { %v1110_v51 = vsub.f32 %v1086_v27, %v1100_v49 }
 0x606   :  { %v1501_v38 = vpop.eup %1500  ;;  %v1123_v50 = vmul.f32 1.442695, %v1110_v51 }
 0x607   :  { %1137 = vadd.xlane.f32.xlu0 %v1501_v38 }
 0x608   :  { %1502 = vpow2.f32 %v1123_v50 }
 0x60b   :  { %v1102_v52 = vpop.xlane.xlu0 %1101 }
 0x60c   :  { %v1111_v28 = vsub.f32 %v1087_v55, %v1102_v52 }
 0x60e   :  { %v1503_v53 = vpop.eup %1502  ;;  %v1125_v33 = vmul.f32 1.442695, %v1111_v28 }
 0x60f   :  { %1139 = vadd.xlane.f32.xlu1 %v1503_v53 }
 0x610   :  { %1504 = vpow2.f32 %v1125_v33 }
 0x613   :  { %v1104_v18 = vpop.xlane.xlu1 %1103 }
 0x614   :  { %v1112_v21 = vsub.f32 %v1088_v31, %v1104_v18 }
 0x616   :  { %v1505_v54 = vpop.eup %1504  ;;  %v1127_v17 = vmul.f32 1.442695, %v1112_v21 }
 0x617   :  { %1141 = vadd.xlane.f32.xlu2 %v1505_v54 }
 0x618   :  { %1506 = vpow2.f32 %v1127_v17 }
 0x61e   :  { %v1507_v15 = vpop.eup %1506 }
 0x61f   :  { %1143 = vadd.xlane.f32.xlu0 %v1507_v15 }
 0x65a   :  { %v1130_v56 = vpop.xlane.xlu2 %1129 }
 0x65b   :  { %1508 = vlog2.f32 %v1130_v56 }
 0x661   :  { %v1509_v57 = vpop.eup %1508 }
 0x662   :  { %v1146_v58 = vmul.f32 0.6931472, %v1509_v57  ;;  %v1132_v60 = vpop.xlane.xlu0 %1131 }
 0x663   :  { %1510 = vlog2.f32 %v1132_v60 }
 0x664   :  { %v1161_v61 = vsub.f32 %v1105_v34, %v1146_v58 }
 0x666   :  { %1169 = vst [vmem:[%s2027_s14] sm:$0xff] %v1161_v61 }
 0x669   :  { %v1511_v62 = vpop.eup %1510 }
 0x66a   :  { %v1148_v3 = vmul.f32 0.6931472, %v1511_v62  ;;  %v1134_v10 = vpop.xlane.xlu1 %1133 }
 0x66b   :  { %1512 = vlog2.f32 %v1134_v10 }
 0x66c   :  { %v1162_v63 = vsub.f32 %v1106_v59, %v1148_v3 }
 0x66e   :  { %1170 = vst [vmem:[%s2027_s14 + $0x8] sm:$0xff] %v1162_v63 }
 0x671   :  { %v1513_v1 = vpop.eup %1512 }
 0x672   :  { %v1150_v2 = vmul.f32 0.6931472, %v1513_v1  ;;  %v1136_v12 = vpop.xlane.xlu2 %1135 }
 0x673   :  { %1514 = vlog2.f32 %v1136_v12 }
 0x674   :  { %v1163_v6 = vsub.f32 %v1107_v40, %v1150_v2 }
 0x676   :  { %1171 = vst [vmem:[%s2027_s14 + $0x10] sm:$0xff] %v1163_v6 }
 0x679   :  { %v1515_v8 = vpop.eup %1514 }
 0x67a   :  { %v1152_v9 = vmul.f32 0.6931472, %v1515_v8  ;;  %v1138_v11 = vpop.xlane.xlu0 %1137 }
 0x67b   :  { %1516 = vlog2.f32 %v1138_v11 }
 0x67c   :  { %v1164_v14 = vsub.f32 %v1108_v42, %v1152_v9 }
 0x67e   :  { %1172 = vst [vmem:[%s2027_s14 + $0x18] sm:$0xff] %v1164_v14 }
 0x681   :  { %v1517_v16 = vpop.eup %1516 }
 0x682   :  { %v1154_v19 = vmul.f32 0.6931472, %v1517_v16  ;;  %v1140_v20 = vpop.xlane.xlu1 %1139 }
 0x683   :  { %1518 = vlog2.f32 %v1140_v20 }
 0x684   :  { %v1165_v22 = vsub.f32 %v1109_v46, %v1154_v19 }
 0x686   :  { %1173 = vst [vmem:[%s2027_s14 + $0x20] sm:$0xff] %v1165_v22 }
 0x689   :  { %v1519_v23 = vpop.eup %1518 }
 0x68a   :  { %v1156_v24 = vmul.f32 0.6931472, %v1519_v23  ;;  %v1142_v25 = vpop.xlane.xlu2 %1141 }
 0x68b   :  { %1520 = vlog2.f32 %v1142_v25 }
 0x68c   :  { %v1166_v26 = vsub.f32 %v1110_v51, %v1156_v24 }
 0x68e   :  { %1174 = vst [vmem:[%s2027_s14 + $0x28] sm:$0xff] %v1166_v26 }
 0x691   :  { %v1521_v27 = vpop.eup %1520 }
 0x692   :  { %v1158_v29 = vmul.f32 0.6931472, %v1521_v27  ;;  %v1144_v4 = vpop.xlane.xlu0 %1143 }
 0x693   :  { %1522 = vlog2.f32 %v1144_v4 }
 0x694   :  { %v1167_v55 = vsub.f32 %v1111_v28, %v1158_v29 }
 0x696   :  { %1175 = vst [vmem:[%s2027_s14 + $0x30] sm:$0xff] %v1167_v55 }
 0x699   :  { %v1523_v13 = vpop.eup %1522 }
 0x69a   :  { %v1160_v30 = vmul.f32 0.6931472, %v1523_v13 }
 0x69c   :  { %v1168_v31 = vsub.f32 %v1112_v21, %v1160_v30 }
 0x69e   :  { %1176 = vst [vmem:[%s2027_s14 + $0x38] sm:$0xff] %v1168_v31 }
 0x69f   :  { %1181 = vsyncpa [#allocation3], 1 }
 0x6a0   :  { %1182 = vsyncpa [#allocation5], 1 }
 0x6a1   :  { %1183 = vsyncpa [#allocation8], 1 }

</bundles_post_ra>
